<compile_context>
chip_gen: v7x
topology: tpu7x:2x2x1
jax: 0.10.0
libtpu: 0.0.40
codegen_flags: <defaults>
</compile_context>

<pallas_src>
import functools

import jax
import jax.numpy as jnp
from jax import lax
from jax.experimental import pallas as pl
from jax.experimental.pallas import tpu as pltpu


def _c_discriminator_kernel(x_ref, w1_ref, b1_ref, gamma_ref, beta_ref,
                            w2_ref, b2_ref, o_ref, *, valid_out, eps=1e-5):
    # ---- Linear 1 (bf16 operands on the MXU, f32 accumulate) ----
    x = x_ref[...].astype(jnp.bfloat16)
    h = jnp.dot(x, w1_ref[...], preferred_element_type=jnp.float32) + b1_ref[...]

    # ---- LeakyReLU (negative_slope = 0.01) ----
    h = jnp.maximum(h, 0.01 * h)

    # ---- BatchNorm1d over the batch axis (training-mode, biased var) ----
    # Single-pass stats: E[h], E[h^2]; fused affine: one scale/shift pass.
    inv_n = jnp.float32(1.0 / h.shape[0])
    s1 = jnp.sum(h, axis=0, keepdims=True)
    s2 = jnp.sum(h * h, axis=0, keepdims=True)
    mean = s1 * inv_n
    var = jnp.maximum(s2 * inv_n - mean * mean, 0.0)
    scale = gamma_ref[...] * lax.rsqrt(var + eps)
    shift = beta_ref[...] - mean * scale
    h = h * scale + shift

    # ---- Linear 2 (bf16 operands on the MXU, f32 accumulate) ----
    logits = jnp.dot(h.astype(jnp.bfloat16), w2_ref[...],
                     preferred_element_type=jnp.float32) + b2_ref[...]

    # ---- Mask lane-padded classes so they contribute nothing to logsumexp ----
    if logits.shape[-1] != valid_out:
        col = lax.broadcasted_iota(jnp.int32, logits.shape, 1)
        logits = jnp.where(col < valid_out, logits, jnp.float32(-1e30))

    # ---- LogSoftmax (apply_log=True) over the class dim ----
    m = jnp.max(logits, axis=-1, keepdims=True)
    z = logits - m
    lse = jnp.log(jnp.sum(jnp.exp(z), axis=-1, keepdims=True))
    o_ref[...] = (z - lse).astype(o_ref.dtype)


def c_discriminator_forward(x, params):
    """x: [batch, input_size] float32. Returns log-probs [batch, out_neurons]."""
    w1, b1, gamma, beta, w2, b2 = (
        params["w1"], params["b1"], params["gamma"], params["beta"],
        params["w2"], params["b2"],
    )
    batch = x.shape[0]
    out_neurons = w2.shape[1]

    # Lane-pad the classifier head to a multiple of 128 so logits / output
    # stores are unmasked lane-dense (the padded lanes are masked to -inf
    # inside the kernel before the logsumexp, keeping the math exact).
    out_pad = -(-out_neurons // 128) * 128
    if out_pad != out_neurons:
        w2 = jnp.pad(w2, ((0, 0), (0, out_pad - out_neurons)))
        b2 = jnp.pad(b2, ((0, 0), (0, out_pad - out_neurons)))

    kernel = functools.partial(_c_discriminator_kernel, valid_out=out_neurons)

    out = pl.pallas_call(
        kernel,
        out_shape=jax.ShapeDtypeStruct((batch, out_pad), jnp.float32),
        in_specs=[
            pl.BlockSpec(memory_space=pltpu.VMEM),  # x
            pl.BlockSpec(memory_space=pltpu.VMEM),  # w1 (bf16)
            pl.BlockSpec(memory_space=pltpu.VMEM),  # b1
            pl.BlockSpec(memory_space=pltpu.VMEM),  # gamma
            pl.BlockSpec(memory_space=pltpu.VMEM),  # beta
            pl.BlockSpec(memory_space=pltpu.VMEM),  # w2 (bf16)
            pl.BlockSpec(memory_space=pltpu.VMEM),  # b2
        ],
        out_specs=pl.BlockSpec(memory_space=pltpu.VMEM),
        compiler_params=pltpu.CompilerParams(vmem_limit_bytes=64 << 20),
    )(x, w1, b1, gamma, beta, w2, b2)

    if out_pad != out_neurons:
        out = out[:, :out_neurons]
    return out


def init_params(key, input_size, lin_neurons, out_neurons):
    """Deterministic synthetic init (PyTorch-like uniform fan-in scaling).

    Weights are stored [in, out] and in bf16 (MXU-native); biases / BN params
    stay f32.
    """
    k1, k2, k3, k4 = jax.random.split(key, 4)
    bound1 = 1.0 / jnp.sqrt(input_size)
    bound2 = 1.0 / jnp.sqrt(lin_neurons)
    return {
        "w1": jax.random.uniform(k1, (input_size, lin_neurons), jnp.float32,
                                 -bound1, bound1).astype(jnp.bfloat16),
        "b1": jax.random.uniform(k2, (1, lin_neurons), jnp.float32,
                                 -bound1, bound1),
        "gamma": jnp.ones((1, lin_neurons), jnp.float32),   # BN weight init
        "beta": jnp.zeros((1, lin_neurons), jnp.float32),   # BN bias init
        "w2": jax.random.uniform(k3, (lin_neurons, out_neurons), jnp.float32,
                                 -bound2, bound2).astype(jnp.bfloat16),
        "b2": jax.random.uniform(k4, (1, out_neurons), jnp.float32,
                                 -bound2, bound2),
    }


if __name__ == "__main__":
    # Small shapes consistent with the module (lin_blocks=1):
    #   input_size=32, lin_neurons=64 (stand-in for 512), out_neurons=100
    #   (stand-in for 2742; deliberately NOT a multiple of 128 so the
    #   lane-padding + masking path is exercised), batch=8.
    batch, input_size, lin_neurons, out_neurons = 8, 32, 64, 100

    key = jax.random.PRNGKey(0)
    kx, kp = jax.random.split(key)
    x = jax.random.normal(kx, (batch, input_size), jnp.float32)
    params = init_params(kp, input_size, lin_neurons, out_neurons)

    out = c_discriminator_forward(x, params)
    jax.block_until_ready(out)

    # Sanity: log-softmax rows must sum (in prob space) to ~1, shape unpadded.
    row_sums = jnp.sum(jnp.exp(out), axis=-1)
    assert out.shape == (batch, out_neurons)
    assert bool(jnp.all(jnp.abs(row_sums - 1.0) < 1e-3))
    assert bool(jnp.all(jnp.isfinite(out)))

    print("KERNEL_OK")
</pallas_src>

<mosaic_0001>
module attributes {stable_mosaic.version = 11 : i64} {
  func.func @_c_discriminator_kernel(%arg0: memref<8x32xf32, #tpu.memory_space<vmem>>, %arg1: memref<32x64xbf16, #tpu.memory_space<vmem>>, %arg2: memref<1x64xf32, #tpu.memory_space<vmem>>, %arg3: memref<1x64xf32, #tpu.memory_space<vmem>>, %arg4: memref<1x64xf32, #tpu.memory_space<vmem>>, %arg5: memref<64x128xbf16, #tpu.memory_space<vmem>>, %arg6: memref<1x128xf32, #tpu.memory_space<vmem>>, %arg7: memref<8x128xf32, #tpu.memory_space<vmem>>) attributes {dimension_semantics = [], scalar_prefetch = 0 : i64, scratch_operands = 0 : i64, tpu.core_type = #tpu.core_type<tc>} {
    %c0 = arith.constant 0 : index
    %c0_0 = arith.constant 0 : index
    %0 = vector.load %arg0[%c0, %c0_0] : memref<8x32xf32, #tpu.memory_space<vmem>>, vector<8x32xf32>
    %1 = arith.truncf %0 : vector<8x32xf32> to vector<8x32xbf16>
    %c0_1 = arith.constant 0 : index
    %c0_2 = arith.constant 0 : index
    %2 = vector.load %arg1[%c0_1, %c0_2] : memref<32x64xbf16, #tpu.memory_space<vmem>>, vector<32x64xbf16>
    %cst = arith.constant dense<0.000000e+00> : vector<8x64xf32>
    %3 = tpu.matmul %1, %2, %cst {dimension_numbers = #tpu.dot_dimension_numbers<[1], [0], [0], [1], [0, 0, 1, 1], [], []>} : vector<8x32xbf16>, vector<32x64xbf16>, vector<8x64xf32> -> vector<8x64xf32>
    %c0_3 = arith.constant 0 : index
    %c0_4 = arith.constant 0 : index
    %4 = vector.load %arg2[%c0_3, %c0_4] : memref<1x64xf32, #tpu.memory_space<vmem>>, vector<1x64xf32>
    %5 = vector.broadcast %4 : vector<1x64xf32> to vector<8x64xf32>
    %6 = arith.addf %3, %5 : vector<8x64xf32>
    %cst_5 = arith.constant 0.00999999977 : f32
    %7 = vector.broadcast %cst_5 : f32 to vector<8x64xf32>
    %8 = arith.mulf %7, %6 : vector<8x64xf32>
    %9 = arith.maximumf %6, %8 : vector<8x64xf32>
    %cst_6 = arith.constant dense<0.000000e+00> : vector<64xf32>
    %10 = vector.multi_reduction <add>, %9, %cst_6 [0] : vector<8x64xf32> to vector<64xf32>
    %11 = vector.shape_cast %10 : vector<64xf32> to vector<1x64xf32>
    %12 = arith.mulf %9, %9 : vector<8x64xf32>
    %cst_7 = arith.constant dense<0.000000e+00> : vector<64xf32>
    %13 = vector.multi_reduction <add>, %12, %cst_7 [0] : vector<8x64xf32> to vector<64xf32>
    %14 = vector.shape_cast %13 : vector<64xf32> to vector<1x64xf32>
    %cst_8 = arith.constant 1.250000e-01 : f32
    %15 = vector.broadcast %cst_8 : f32 to vector<1x64xf32>
    %16 = arith.mulf %11, %15 : vector<1x64xf32>
    %cst_9 = arith.constant 1.250000e-01 : f32
    %17 = vector.broadcast %cst_9 : f32 to vector<1x64xf32>
    %18 = arith.mulf %14, %17 : vector<1x64xf32>
    %19 = arith.mulf %16, %16 : vector<1x64xf32>
    %20 = arith.subf %18, %19 : vector<1x64xf32>
    %cst_10 = arith.constant 0.000000e+00 : f32
    %21 = vector.broadcast %cst_10 : f32 to vector<1x64xf32>
    %22 = arith.maximumf %20, %21 : vector<1x64xf32>
    %c0_11 = arith.constant 0 : index
    %c0_12 = arith.constant 0 : index
    %23 = vector.load %arg3[%c0_11, %c0_12] : memref<1x64xf32, #tpu.memory_space<vmem>>, vector<1x64xf32>
    %cst_13 = arith.constant 9.99999974E-6 : f32
    %24 = vector.broadcast %cst_13 : f32 to vector<1x64xf32>
    %25 = arith.addf %22, %24 : vector<1x64xf32>
    %26 = math.rsqrt %25 : vector<1x64xf32>
    %27 = arith.mulf %23, %26 : vector<1x64xf32>
    %c0_14 = arith.constant 0 : index
    %c0_15 = arith.constant 0 : index
    %28 = vector.load %arg4[%c0_14, %c0_15] : memref<1x64xf32, #tpu.memory_space<vmem>>, vector<1x64xf32>
    %29 = arith.mulf %16, %27 : vector<1x64xf32>
    %30 = arith.subf %28, %29 : vector<1x64xf32>
    %31 = vector.broadcast %27 : vector<1x64xf32> to vector<8x64xf32>
    %32 = arith.mulf %9, %31 : vector<8x64xf32>
    %33 = vector.broadcast %30 : vector<1x64xf32> to vector<8x64xf32>
    %34 = arith.addf %32, %33 : vector<8x64xf32>
    %35 = arith.truncf %34 : vector<8x64xf32> to vector<8x64xbf16>
    %c0_16 = arith.constant 0 : index
    %c0_17 = arith.constant 0 : index
    %36 = vector.load %arg5[%c0_16, %c0_17] : memref<64x128xbf16, #tpu.memory_space<vmem>>, vector<64x128xbf16>
    %cst_18 = arith.constant dense<0.000000e+00> : vector<8x128xf32>
    %37 = tpu.matmul %35, %36, %cst_18 {dimension_numbers = #tpu.dot_dimension_numbers<[1], [0], [0], [1], [0, 0, 1, 1], [], []>} : vector<8x64xbf16>, vector<64x128xbf16>, vector<8x128xf32> -> vector<8x128xf32>
    %c0_19 = arith.constant 0 : index
    %c0_20 = arith.constant 0 : index
    %38 = vector.load %arg6[%c0_19, %c0_20] : memref<1x128xf32, #tpu.memory_space<vmem>>, vector<1x128xf32>
    %39 = vector.broadcast %38 : vector<1x128xf32> to vector<8x128xf32>
    %40 = arith.addf %37, %39 : vector<8x128xf32>
    %41 = tpu.iota {dimensions = array<i32: 1>} : vector<8x128xi32>
    %c100_i32 = arith.constant 100 : i32
    %42 = vector.broadcast %c100_i32 : i32 to vector<8x128xi32>
    %43 = arith.cmpi slt, %41, %42 : vector<8x128xi32>
    %cst_21 = arith.constant -1.000000e+30 : f32
    %44 = vector.broadcast %cst_21 : f32 to vector<8x128xf32>
    %45 = arith.select %43, %40, %44 : vector<8x128xi1>, vector<8x128xf32>
    %cst_22 = arith.constant dense<0xFF800000> : vector<8xf32>
    %46 = vector.multi_reduction <maximumf>, %45, %cst_22 [1] : vector<8x128xf32> to vector<8xf32>
    %47 = vector.shape_cast %46 : vector<8xf32> to vector<8x1xf32>
    %48 = vector.broadcast %47 : vector<8x1xf32> to vector<8x128xf32>
    %49 = arith.subf %45, %48 : vector<8x128xf32>
    %50 = math.exp %49 : vector<8x128xf32>
    %cst_23 = arith.constant dense<0.000000e+00> : vector<8xf32>
    %51 = vector.multi_reduction <add>, %50, %cst_23 [1] : vector<8x128xf32> to vector<8xf32>
    %52 = vector.shape_cast %51 : vector<8xf32> to vector<8x1xf32>
    %53 = math.log %52 : vector<8x1xf32>
    %54 = vector.broadcast %53 : vector<8x1xf32> to vector<8x128xf32>
    %55 = arith.subf %49, %54 : vector<8x128xf32>
    %c0_24 = arith.constant 0 : index
    %c0_25 = arith.constant 0 : index
    %56 = vector.load %arg7[%c0_24, %c0_25] : memref<8x128xf32, #tpu.memory_space<vmem>>, vector<8x128xf32>
    tpu.vector_store %arg7[%c0_24, %c0_25], %55 {strides = array<i32>} : memref<8x128xf32, #tpu.memory_space<vmem>>, vector<8x128xf32>,
    return
  }
}

</mosaic_0001>

<bundles_post_ra>
// kernel: tpu_custom_call.1
= control target key start
LH: loop header
LB: loop body
LE: loop exit
PB: predicated region body
PF: predicated region fallthrough
CT: control target
= control target key end

     0   :  { %12 = vsyncpa [#allocation3], 0  ;;  %s747_s0 = inlined_call_operand.hbm [shape: f32[8,32], index: 0, kind: input, shape index: {}]   ;;  %s748_s1 = inlined_call_operand.hbm [shape: bf16[32,64], index: 1, kind: input, shape index: {}]   ;;  %s749_s2 = inlined_call_operand.hbm [shape: f32[1,64], index: 2, kind: input, shape index: {}]   ;;  %s750_s3 = inlined_call_operand.hbm [shape: f32[1,64], index: 3, kind: input, shape index: {}]   ;;  %s751_s4 = inlined_call_operand.hbm [shape: f32[1,64], index: 4, kind: input, shape index: {}]   ;;  %s752_s5 = inlined_call_operand.hbm [shape: bf16[64,128], index: 5, kind: input, shape index: {}]   ;;  %s753_s6 = inlined_call_operand.hbm [shape: f32[1,128], index: 6, kind: input, shape index: {}]   ;;  %s754_s7 = inlined_call_operand.hbm [shape: f32[8,128], index: 7, kind: output, shape index: {}]  }
   0x1   :  { %13 = vsyncpa [#allocation6], 0 }
   0x2   :  { %14 = vsyncpa [#allocation9], 0 }
   0x3   :  { %15 = vsyncpa [#allocation12], 0 }
   0x4   :  { %16 = vsyncpa [#allocation4], 0  ;;  %s590_s24 = smov [#allocation5]   ;;  %s404_s28 = scalar_lea.hbm %s748_s1, 256 }
   0x5   :  { %s32_s25 = sshll.u32 %s590_s24, 4  ;;  %p405_p0 = scmp.ne.s32.totalorder %s748_s1, %s404_s28  ;;  %s33_s25 = int_to_ptr.vmem [resolvable:$true] %s32_s25 }
   0x6   :  { %p408_p1 = scmp.lt.u32.totalorder %s404_s28, %s748_s1 }
   0x8   :  { %p410_p2 = pnand %p408_p1, %p405_p0 }
   0xa   :  { %413 = shalt.err (!%p410_p2)
}
   0xb   :  { %s414_s10 = scalar_lea.vmem %s33_s25, 256  ;;  %p419_p4 = scmp.lt.s32.totalorder %s33_s25, %s33_s25 }
   0xc   :  { %p415_p3 = scmp.ne.s32.totalorder %s33_s25, %s414_s10  ;;  %p420_p5 = scmp.lt.s32.totalorder %s414_s10, %s414_s10 }
   0xe   :  { %p421_p6 = por %p420_p5, %p419_p4 }
  0x10   :  { %p422_p7 = pnand %p421_p6, %p415_p3 }
  0x12   :  { %425 = shalt.err (!%p422_p7)
}
  0x13   :  { %s591_s11 = smov 64   ;;  %s592_s12 = smov 4  }
  0x14   :  { %38 = dma.hbm_to_vmem [thread:$0]  %s748_s1, 256, %s33_s25, [#allocation6], %s591_s11, %s591_s11, %s592_s12  }
  0x15   :  { %s593_s15 = smov [#allocation8]   ;;  %s594_s17 = smov [#allocation11]  }
  0x16   :  { %s55_s16 = sshll.u32 %s593_s15, 4  ;;  %s74_s18 = sshll.u32 %s594_s17, 4  ;;  %s56_s16 = int_to_ptr.vmem [resolvable:$true] %s55_s16  ;;  %s75_s18 = int_to_ptr.vmem [resolvable:$true] %s74_s18 }
  0x17   :  { %s426_s21 = scalar_lea.hbm %s750_s3, 16 }
  0x18   :  { %p427_p8 = scmp.ne.s32.totalorder %s750_s3, %s426_s21  ;;  %p430_p9 = scmp.lt.u32.totalorder %s426_s21, %s750_s3 }
  0x1a   :  { %p432_p10 = pnand %p430_p9, %p427_p8 }
  0x1c   :  { %435 = shalt.err (!%p432_p10)
}
  0x1d   :  { %s436_s1 = scalar_lea.vmem %s56_s16, 16  ;;  %s440_s25 = scalar_lea.vmem %s56_s16, 32 }
  0x1e   :  { %p437_p11 = scmp.ne.s32.totalorder %s56_s16, %s436_s1  ;;  %p441_p12 = scmp.lt.s32.totalorder %s56_s16, %s56_s16 }
  0x1f   :  { %p442_p13 = scmp.lt.s32.totalorder %s440_s25, %s436_s1 }
  0x21   :  { %p443_p0 = por %p442_p13, %p441_p12 }
  0x23   :  { %p444_p1 = pnand %p443_p0, %p437_p11 }
  0x25   :  { %447 = shalt.err (!%p444_p1)
}
  0x26   :  { %58 = dma.hbm_to_vmem [thread:$0]  %s750_s3, 16, %s56_s16, [#allocation9]  }
  0x27   :  { %s448_s8 = scalar_lea.hbm %s752_s5, 512 }
  0x28   :  { %p449_p2 = scmp.ne.s32.totalorder %s752_s5, %s448_s8  ;;  %p452_p3 = scmp.lt.u32.totalorder %s448_s8, %s752_s5 }
  0x2a   :  { %p454_p4 = pnand %p452_p3, %p449_p2 }
  0x2c   :  { %457 = shalt.err (!%p454_p4)
}
  0x2d   :  { %s458_s15 = scalar_lea.vmem %s75_s18, 512  ;;  %p463_p6 = scmp.lt.s32.totalorder %s75_s18, %s75_s18 }
  0x2e   :  { %p459_p5 = scmp.ne.s32.totalorder %s75_s18, %s458_s15  ;;  %p464_p7 = scmp.lt.s32.totalorder %s458_s15, %s458_s15 }
  0x30   :  { %p465_p8 = por %p464_p7, %p463_p6 }
  0x32   :  { %p466_p9 = pnand %p465_p8, %p459_p5 }
  0x34   :  { %469 = shalt.err (!%p466_p9)
}
  0x35   :  { %80 = dma.hbm_to_vmem [thread:$0]  %s752_s5, 512, %s75_s18, [#allocation12], %s591_s11, %s591_s11, %s592_s12  }
  0x36   :  { %s595_s17 = smov [#allocation2]   ;;  %s596_s20 = smov [#allocation7]  }
  0x37   :  { %s23_s19 = sshll.u32 %s595_s17, 4  ;;  %s45_s21 = sshll.u32 %s596_s20, 4  ;;  %s24_s19 = int_to_ptr.vmem [resolvable:$true] %s23_s19  ;;  %s46_s21 = int_to_ptr.vmem [resolvable:$true] %s45_s21 }
  0x38   :  { %s470_s24 = scalar_lea.hbm %s747_s0, 128 }
  0x39   :  { %p471_p10 = scmp.ne.s32.totalorder %s747_s0, %s470_s24  ;;  %p474_p11 = scmp.lt.u32.totalorder %s470_s24, %s747_s0 }
  0x3b   :  { %p476_p12 = pnand %p474_p11, %p471_p10 }
  0x3d   :  { %479 = shalt.err (!%p476_p12)
}
  0x3e   :  { %s480_s5 = scalar_lea.vmem %s24_s19, 128  ;;  %p485_p0 = scmp.lt.s32.totalorder %s24_s19, %s24_s19 }
  0x3f   :  { %p481_p13 = scmp.ne.s32.totalorder %s24_s19, %s480_s5  ;;  %p486_p1 = scmp.lt.s32.totalorder %s480_s5, %s480_s5 }
  0x41   :  { %p487_p2 = por %p486_p1, %p485_p0 }
  0x43   :  { %p488_p3 = pnand %p487_p2, %p481_p13 }
  0x45   :  { %491 = shalt.err (!%p488_p3)
}
  0x46   :  { %26 = dma.hbm_to_vmem [thread:$0]  %s747_s0, 128, %s24_s19, [#allocation3]  }
  0x47   :  { %s492_s29 = scalar_lea.hbm %s749_s2, 16 }
  0x48   :  { %p493_p4 = scmp.ne.s32.totalorder %s749_s2, %s492_s29  ;;  %p496_p5 = scmp.lt.u32.totalorder %s492_s29, %s749_s2 }
  0x4a   :  { %p498_p6 = pnand %p496_p5, %p493_p4 }
  0x4c   :  { %501 = shalt.err (!%p498_p6)
}
  0x4d   :  { %s502_s13 = scalar_lea.vmem %s46_s21, 16  ;;  %s506_s14 = scalar_lea.vmem %s46_s21, 32 }
  0x4e   :  { %p503_p7 = scmp.ne.s32.totalorder %s46_s21, %s502_s13  ;;  %p507_p8 = scmp.lt.s32.totalorder %s46_s21, %s46_s21 }
  0x4f   :  { %p508_p9 = scmp.lt.s32.totalorder %s506_s14, %s502_s13 }
  0x51   :  { %p509_p10 = por %p508_p9, %p507_p8 }
  0x53   :  { %p510_p11 = pnand %p509_p10, %p503_p7 }
  0x55   :  { %513 = shalt.err (!%p510_p11)
}
  0x56   :  { %48 = dma.hbm_to_vmem [thread:$0]  %s749_s2, 16, %s46_s21, [#allocation6]  }
  0x57   :  { %s597_s3 = smov [#allocation10]   ;;  %s598_s17 = smov [#allocation13]  }
  0x58   :  { %s65_s16 = sshll.u32 %s597_s3, 4  ;;  %s87_s19 = sshll.u32 %s598_s17, 4  ;;  %s66_s16 = int_to_ptr.vmem [resolvable:$true] %s65_s16  ;;  %s88_s19 = int_to_ptr.vmem [resolvable:$true] %s87_s19 }
  0x59   :  { %s514_s23 = scalar_lea.hbm %s751_s4, 16 }
  0x5a   :  { %p515_p12 = scmp.ne.s32.totalorder %s751_s4, %s514_s23  ;;  %p518_p13 = scmp.lt.u32.totalorder %s514_s23, %s751_s4 }
  0x5c   :  { %p520_p0 = pnand %p518_p13, %p515_p12 }
  0x5e   :  { %523 = shalt.err (!%p520_p0)
}
  0x5f   :  { %s524_s2 = scalar_lea.vmem %s66_s16, 16  ;;  %s528_s21 = scalar_lea.vmem %s66_s16, 32 }
  0x60   :  { %p525_p1 = scmp.ne.s32.totalorder %s66_s16, %s524_s2  ;;  %p529_p2 = scmp.lt.s32.totalorder %s66_s16, %s66_s16 }
  0x61   :  { %p530_p3 = scmp.lt.s32.totalorder %s528_s21, %s524_s2 }
  0x63   :  { %p531_p4 = por %p530_p3, %p529_p2 }
  0x65   :  { %p532_p5 = pnand %p531_p4, %p525_p1 }
  0x67   :  { %535 = shalt.err (!%p532_p5)
}
  0x68   :  { %68 = dma.hbm_to_vmem [thread:$0]  %s751_s4, 16, %s66_s16, [#allocation9]  }
  0x69   :  { %s536_s18 = scalar_lea.hbm %s753_s6, 16 }
  0x6a   :  { %p537_p6 = scmp.ne.s32.totalorder %s753_s6, %s536_s18  ;;  %p540_p7 = scmp.lt.u32.totalorder %s536_s18, %s753_s6 }
  0x6c   :  { %p542_p8 = pnand %p540_p7, %p537_p6 }
  0x6e   :  { %545 = shalt.err (!%p542_p8)
}
  0x6f   :  { %s546_s9 = scalar_lea.vmem %s88_s19, 16  ;;  %s550_s10 = scalar_lea.vmem %s88_s19, 32 }
  0x70   :  { %p547_p9 = scmp.ne.s32.totalorder %s88_s19, %s546_s9  ;;  %p551_p10 = scmp.lt.s32.totalorder %s88_s19, %s88_s19 }
  0x71   :  { %p552_p11 = scmp.lt.s32.totalorder %s550_s10, %s546_s9 }
  0x73   :  { %p553_p12 = por %p552_p11, %p551_p10 }
  0x75   :  { %p554_p13 = pnand %p553_p12, %p547_p9 }
  0x77   :  { %557 = shalt.err (!%p554_p13)
}
  0x78   :  { %90 = dma.hbm_to_vmem [thread:$0]  %s753_s6, 16, %s88_s19, [#allocation12]  }
  0x79   :  { %580 = dma.done.wait [#allocation3], 128  }
  0x7a   :  { %581 = vsyncadd [#allocation3], 4294967168 }
  0x7b   :  { %582 = dma.done.wait [#allocation6], 272  }
  0x7c   :  { %583 = vsyncadd [#allocation6], 4294967024 }
  0x7d   :  { %584 = dma.done.wait [#allocation9], 32  }
  0x7e   :  { %585 = vsyncadd [#allocation9], 4294967264 }
  0x7f   :  { %586 = dma.done.wait [#allocation12], 528  }
  0x80   :  { %587 = vsyncadd [#allocation12], 4294966768  ;;  %v599_v0 = vmov 0.0   ;;  %vm600_vm0 = vmmov 0   ;;  %v392_v1 = vld [vmem:[#allocation5] sm:$0xff]   ;;  %v393_v2 = vld [vmem:[#allocation5 + $0x8] sm:$0xff]   ;;  %v213_v38 = vlaneseq }
  0x81   :  { %360 = vmatprep.subr.bf16.mxu0 %v599_v0  ;;  %364 = vmatprep.mubr.msk.bf16.mxu0 %vm600_vm0, %v599_v0  ;;  %v113_v3 = vld [vmem:[#allocation2] sm:$0xff]  ;;  %vm138_vm1 = vcmask 261120   ;;  %v396_v7 = vld [vmem:[#allocation11 + $0x10] sm:$0xff]   ;;  %v397_v8 = vld [vmem:[#allocation11 + $0x18] sm:$0xff]   ;;  %vm184_vm2 = vcmask 523264   ;;  %s601_s6 = smov [#allocation14]  }
  0x82   :  { %368 = vmatprep.subr.bf16.mxu1 %v599_v0  ;;  %376 = vmatprep.mubr.msk.bf16.mxu1 %vm600_vm0, %v599_v0  ;;  %v114_v4 = vpack.c.bf16 %v113_v3, %v113_v3  ;;  %v394_v5 = vld [vmem:[#allocation11] sm:$0xff]   ;;  %v395_v6 = vld [vmem:[#allocation11 + $0x8] sm:$0xff]   ;;  %v342_v9 = vld [vmem:[#allocation7] ss:$0 sm:$0xff]  ;;  %v214_v39 = vshrl.u32 %v213_v38, 7  ;;  %v310_v52 = vand.u32 127, %v213_v38 }
  0x83   :  { %361 = vmatpush3.bf16.msra.mxu0 %v392_v1  ;;  %369 = vmatpush3.bf16.msra.mxu1 %v394_v5  ;;  %v205_v40 = vld [vmem:[#allocation8] sm:$0x1]  ;;  %v209_v44 = vld [vmem:[#allocation10] sm:$0x1]  ;;  %v346_v53 = vld [vmem:[#allocation13] ss:$0 sm:$0xff] }
  0x84   :  { %362 = vmatprep.subr.bf16.mxu0 %v599_v0  ;;  %370 = vmatprep.subr.bf16.mxu1 %v599_v0  ;;  %v215_v41 = vsub.s32 0, %v214_v39  ;;  %vm311_vm3 = vcmp.lt.s32.totalorder %v310_v52, 100  ;;  %s330_s14 = sshll.u32 %s601_s6, 4  ;;  %s331_s14 = int_to_ptr.vmem [resolvable:$true] %s330_s14 }
  0x85   :  { %s558_s0 = scalar_lea.vmem %s331_s14, 128  ;;  %p563_p1 = scmp.lt.s32.totalorder %s331_s14, %s331_s14 }
  0x86   :  { %p559_p0 = scmp.ne.s32.totalorder %s331_s14, %s558_s0  ;;  %p564_p2 = scmp.lt.s32.totalorder %s558_s0, %s558_s0 }
  0x87   :  { %363 = vmatpush3.bf16.msra.mxu0 %v393_v2  ;;  %371 = vmatpush3.bf16.msra.mxu1 %v395_v6 }
  0x88   :  { %372 = vmatprep.subr.bf16.mxu1 %v599_v0  ;;  %p565_p3 = por %p564_p2, %p563_p1 }
  0x8a   :  { %365 = vmatmul.mubr.msk.bf16.vlgmr.msra.gmra.mrb[0].mxu0 %vm138_vm1, %v114_v4  ;;  %p566_p4 = pnand %p565_p3, %p559_p0 }
  0x8b   :  { %373 = vmatpush3.bf16.msra.mxu1 %v396_v7 }
  0x8c   :  { %374 = vmatprep.subr.bf16.mxu1 %v599_v0 }
  0x8f   :  { %375 = vmatpush3.bf16.msra.mxu1 %v397_v8 }
 0x15d   :  { %v176_v10 = vpop.f32.mrb[0].mxu0 }
 0x15e   :  { %v177_v11 = vadd.f32 %v342_v9, %v176_v10  ;;  %v366_v12 = vpop.f32.mrb[1].mxu0 }
 0x15f   :  { %v179_v13 = vpop.f32.mrb[2].mxu0 }
 0x160   :  { %v182_v14 = vmul.f32 0.01, %v177_v11  ;;  %v367_v15 = vpop.f32.mrb[3].mxu0 }
 0x162   :  { %v183_v16 = vmax.f32 %v177_v11, %v182_v14 }
 0x164   :  { %v192_v17 = vmul.f32 %v183_v16, %v183_v16  ;;  %v185_v18 = vsel %vm184_vm2, %v183_v16, 0.0 }
 0x165   :  { %v186_v19 = vrot.slane %v185_v18, 4 }
 0x166   :  { %v193_v20 = vsel %vm184_vm2, %v192_v17, 0.0 }
 0x167   :  { %v187_v21 = vadd.f32 %v186_v19, %v185_v18  ;;  %v194_v22 = vrot.slane %v193_v20, 4 }
 0x169   :  { %v188_v23 = vrot.slane %v187_v21, 2  ;;  %v195_v24 = vadd.f32 %v194_v22, %v193_v20 }
 0x16b   :  { %v189_v25 = vadd.f32 %v188_v23, %v187_v21  ;;  %v196_v26 = vrot.slane %v195_v24, 2 }
 0x16d   :  { %v190_v27 = vrot.slane %v189_v25, 1  ;;  %v197_v28 = vadd.f32 %v196_v26, %v195_v24 }
 0x16f   :  { %v191_v29 = vadd.f32 %v190_v27, %v189_v25  ;;  %v198_v30 = vrot.slane %v197_v28, 1 }
 0x171   :  { %v199_v31 = vadd.f32 %v198_v30, %v197_v28  ;;  %v200_v32 = vmul.f32 0.125, %v191_v29 }
 0x173   :  { %v201_v33 = vmul.f32 0.125, %v199_v31  ;;  %v202_v34 = vmul.f32 %v200_v32, %v200_v32 }
 0x175   :  { %v203_v35 = vsub.f32 %v201_v33, %v202_v34 }
 0x177   :  { %v204_v36 = vmax.f32 %v203_v35, 0.0 }
 0x179   :  { %v206_v37 = vadd.f32 1e-05, %v204_v36 }
 0x17b   :  { %398 = vrsqrt.f32 %v206_v37 }
 0x185   :  { %v399_v42 = vpop.eup %398 }
 0x186   :  { %v208_v43 = vmul.f32 %v399_v42, %v205_v40 }
 0x188   :  { %v210_v45 = vmul.f32 %v208_v43, %v200_v32  ;;  %v216_v46 = vrot.slane %v208_v43, %v215_v41 }
 0x18a   :  { %v211_v47 = vsub.f32 %v209_v44, %v210_v45  ;;  %v218_v48 = vmul.f32 %v216_v46, %v183_v16 }
 0x18c   :  { %v223_v49 = vrot.slane %v211_v47, %v215_v41 }
 0x18e   :  { %v225_v50 = vadd.f32 %v223_v49, %v218_v48 }
 0x190   :  { %v226_v51 = vpack.c.bf16 %v225_v50, %v225_v50 }
 0x192   :  { %377 = vmatmul.mubr.msk.bf16.vlgmr.msra.gmra.mrb[0].mxu1 %vm184_vm2, %v226_v51 }
 0x265   :  { %v303_v54 = vpop.f32.mrb[0].mxu1 }
 0x266   :  { %v304_v55 = vadd.f32 %v346_v53, %v303_v54  ;;  %v378_v56 = vpop.f32.mrb[1].mxu1 }
 0x267   :  { %v306_v57 = vpop.f32.mrb[2].mxu1 }
 0x268   :  { %v379_v58 = vpop.f32.mrb[3].mxu1  ;;  %v312_v59 = vsel %vm311_vm3, %v304_v55, -1e+30 }
 0x269   :  { %313 = vmax.xlane.f32.xlu0 %v312_v59 }
 0x2f6   :  { %v314_v60 = vpop.xlane.xlu0 %313 }
 0x2f7   :  { %v315_v61 = vsub.f32 %v312_v59, %v314_v60 }
 0x2f9   :  { %v316_v62 = vmul.f32 1.442695, %v315_v61 }
 0x2fb   :  { %400 = vpow2.f32 %v316_v62 }
 0x305   :  { %v401_v63 = vpop.eup %400 }
 0x306   :  { %318 = vadd.xlane.f32.xlu0 %v401_v63 }
 0x393   :  { %v319_v0 = vpop.xlane.xlu0 %318 }
 0x394   :  { %402 = vlog2.f32 %v319_v0 }
 0x39e   :  { %v403_v1 = vpop.eup %402 }
 0x39f   :  { %v321_v2 = vmul.f32 0.6931472, %v403_v1 }
 0x3a1   :  { %v322_v3 = vsub.f32 %v315_v61, %v321_v2 }
 0x3a3   :  { %323 = vst [vmem:[#allocation14] sm:$0xff] %v322_v3 }
 0x3a4   :  { %569 = shalt.err (!%p566_p4)
}
 0x3a5   :  { %s570_s16 = scalar_lea.hbm %s754_s7, 128 }
 0x3a6   :  { %p571_p5 = scmp.ne.s32.totalorder %s754_s7, %s570_s16  ;;  %p574_p6 = scmp.lt.u32.totalorder %s570_s16, %s754_s7 }
 0x3a8   :  { %p576_p7 = pnand %p574_p6, %p571_p5 }
 0x3aa   :  { %579 = shalt.err (!%p576_p7)
}
 0x3ab   :  { %333 = dma.vmem_to_hbm [thread:$0]  %s331_s14, 128, %s754_s7, [#allocation4]  }
 0x3ac   :  { %588 = dma.done.wait [#allocation4], 128  }
 0x3ad   :  { %589 = vsyncadd [#allocation4], 4294967168 }
 0x3ae   :  { %337 = vsyncpa [#allocation3], 1 }
 0x3af   :  { %338 = vsyncpa [#allocation6], 1 }
 0x3b0   :  { %339 = vsyncpa [#allocation9], 1 }
 0x3b1   :  { %340 = vsyncpa [#allocation12], 1 }
 0x3b2   :  { %341 = vsyncpa [#allocation4], 1 }

</bundles_post_ra>
